<compile_context>
chip_gen: v7x
topology: tpu7x:2x2x1
jax: 0.10.0
libtpu: 0.0.40
codegen_flags: <defaults>
</compile_context>

<pallas_src>
import functools

import jax
import jax.numpy as jnp
from jax import lax
from jax.experimental import pallas as pl
from jax.experimental.pallas import tpu as pltpu


def _self_attention_kernel(x_full_ref, x_q_ref, wq_ref, bq_ref, wvk_ref,
                           bvk_ref, gamma_ref, *refs, c, n_real, emit_attn):
    """One (batch, q-tile) grid step, channels-first layout.

    x_full_ref : (1, C, Np)  f32   full spatial extent (DMA'd once per batch)
    x_q_ref    : (1, C, TQ)  f32   q-tile of the input (Q projection + residual)
    wq_ref     : (C8, C)     bf16  query weight (PyTorch (out, in) layout)
    bq_ref     : (C8, 1)     f32
    wvk_ref    : (C+C8, C)   bf16  fused value|key weight (value rows first)
    bvk_ref    : (C+C8, 1)   f32
    gamma_ref  : (1,)        f32   SMEM scalar
    outputs    : out (1, C, TQ) f32  [+ attn (1, TQ, Np) bf16 if emit_attn]
    scratch    : v (C, Np) bf16, k (C8, Np) bf16   (cached K/V projection)
    """
    if emit_attn:
        out_ref, attn_ref, v_ref, k_ref = refs
    else:
        out_ref, v_ref, k_ref = refs
        attn_ref = None

    qi = pl.program_id(1)

    # Fused value|key projection over the full spatial extent — computed once
    # per batch (first q-tile) and cached in VMEM scratch for the rest.
    @pl.when(qi == 0)
    def _():
        xf = x_full_ref[0].astype(jnp.bfloat16)                         # (C, Np)
        vk = jnp.dot(wvk_ref[...], xf, preferred_element_type=jnp.float32)
        vk = vk + bvk_ref[...]                                          # (C+C8, Np) f32
        v_ref[...] = vk[:c].astype(v_ref.dtype)
        k_ref[...] = vk[c:].astype(k_ref.dtype)

    x_q = x_q_ref[0]                                                    # (C, TQ) f32

    # Query projection for this q-tile only.
    q_cf = jnp.dot(wq_ref[...], x_q.astype(jnp.bfloat16),
                   preferred_element_type=jnp.float32) + bq_ref[...]    # (C8, TQ)

    # logits[i, j] = q_i . k_j  — contract dim 0 vs dim 0 (no explicit transpose).
    logits = lax.dot_general(q_cf.astype(jnp.bfloat16), k_ref[...],
                             dimension_numbers=(((0,), (0,)), ((), ())),
                             preferred_element_type=jnp.float32)        # (TQ, Np)

    n_pad = logits.shape[-1]
    if n_real < n_pad:
        # Mask padded key columns so they get zero attention weight.
        col = lax.broadcasted_iota(jnp.int32, logits.shape, 1)
        logits = jnp.where(col < n_real, logits, jnp.float32(-1e30))

    # Row softmax in f32 (full key row resident -> single-pass, exact).
    m = jnp.max(logits, axis=-1, keepdims=True)
    e = jnp.exp(logits - m)
    inv = pl.reciprocal(jnp.sum(e, axis=-1, keepdims=True), approx=True)  # (TQ, 1)

    if emit_attn:
        attn = e * inv                                                  # (TQ, Np)
        attn_ref[0] = attn.astype(attn_ref.dtype)                       # lane-dense bf16 store
        p = attn.astype(jnp.bfloat16)
        post_scale = None
    else:
        # Attention map not stored: skip the (TQ, Np) normalization multiply
        # and scale the small PV result per row instead.
        p = e.astype(jnp.bfloat16)
        post_scale = inv

    if c < 256:
        # M = TQ fills the 256-wide MXU rows (v6e/v7x); the small (TQ, C)
        # transpose afterwards lands on the XLU, which is not the binding unit.
        o = lax.dot_general(p, v_ref[...],
                            dimension_numbers=(((1,), (1,)), ((), ())),
                            preferred_element_type=jnp.float32)         # (TQ, C)
        if post_scale is not None:
            o = o * post_scale
        o_cf = o.T                                                      # (C, TQ)
    else:
        if post_scale is not None:
            p = (e * post_scale).astype(jnp.bfloat16)
        o_cf = lax.dot_general(v_ref[...], p,
                               dimension_numbers=(((1,), (1,)), ((), ())),
                               preferred_element_type=jnp.float32)      # (C, TQ)

    gamma = gamma_ref[0]
    out_ref[0] = (gamma * o_cf + x_q).astype(out_ref.dtype)             # lane-dense store


def _round_up(x, m):
    return (x + m - 1) // m * m


def _spatial_tiling(n, desired):
    """Returns (n_pad, tq): padded spatial extent and a lane-dense q-tile."""
    if n % 128 != 0:
        if n <= desired:
            return n, n               # small: single full-extent q-tile, no padding
        n_pad = _round_up(n, 128)     # pad; tail masked in-kernel
    else:
        n_pad = n
    if n_pad <= desired:
        return n_pad, n_pad
    t = max(desired - desired % 128, 128)
    while t >= 128:
        if n_pad % t == 0:
            return n_pad, t
        t -= 128
    return n_pad, 128                 # unreachable: 128 divides n_pad


def _pick_vmem_limit():
    """Per-generation scoped VMEM limit (headroom for Mosaic internal scratch)."""
    try:
        cap = pltpu.get_tpu_info().vmem_capacity_bytes
    except Exception:
        cap = 64 * 1024 * 1024
    return int(min(cap * 5 // 8, 100 * 1024 * 1024))   # 40 MiB on v7x, 80 MiB on v5e/v6e


def self_attention_pallas(x_nchw, params, *, q_tile=256, return_attention=False):
    """x_nchw: (B, C, H, W) float32.

    Returns out (B, C, H, W) — same as the PyTorch forward.  With
    return_attention=True also returns the (B, N, N) attention map in bf16.
    """
    B, C, H, W = x_nchw.shape
    N = H * W
    C8 = params["wq"].shape[0]

    x = x_nchw.reshape(B, C, N).astype(jnp.float32)
    n_pad, tq = _spatial_tiling(N, q_tile)
    if n_pad != N:
        x = jnp.pad(x, ((0, 0), (0, 0), (0, n_pad - N)))

    # bf16 weights for the MXU; value rows first so both slices of the fused
    # projection are simple prefix/suffix row blocks.
    wq = params["wq"].astype(jnp.bfloat16)                                          # (C8, C)
    bq = params["bq"].reshape(C8, 1).astype(jnp.float32)
    w_vk = jnp.concatenate([params["wv"], params["wk"]], axis=0).astype(jnp.bfloat16)   # (C+C8, C)
    b_vk = jnp.concatenate([params["bv"], params["bk"]], axis=0).reshape(C + C8, 1)
    b_vk = b_vk.astype(jnp.float32)
    gamma = params["gamma"].reshape(1).astype(jnp.float32)

    grid = (B, n_pad // tq)
    kernel = functools.partial(_self_attention_kernel, c=C, n_real=N,
                               emit_attn=return_attention)

    in_specs = [
        pl.BlockSpec((1, C, n_pad), lambda b, qi: (b, 0, 0)),    # x full (K/V, fetched once per b)
        pl.BlockSpec((1, C, tq), lambda b, qi: (b, 0, qi)),      # x q-tile (Q + residual)
        pl.BlockSpec((C8, C), lambda b, qi: (0, 0)),             # wq
        pl.BlockSpec((C8, 1), lambda b, qi: (0, 0)),             # bq
        pl.BlockSpec((C + C8, C), lambda b, qi: (0, 0)),         # fused w_v|w_k
        pl.BlockSpec((C + C8, 1), lambda b, qi: (0, 0)),         # fused b_v|b_k
        pl.BlockSpec(memory_space=pltpu.MemorySpace.SMEM),       # gamma scalar
    ]
    out_spec_out = pl.BlockSpec((1, C, tq), lambda b, qi: (b, 0, qi))

    if return_attention:
        out_shape = (jax.ShapeDtypeStruct((B, C, n_pad), jnp.float32),
                     jax.ShapeDtypeStruct((B, n_pad, n_pad), jnp.bfloat16))
        out_specs = [out_spec_out,
                     pl.BlockSpec((1, tq, n_pad), lambda b, qi: (b, qi, 0))]
    else:
        out_shape = jax.ShapeDtypeStruct((B, C, n_pad), jnp.float32)
        out_specs = out_spec_out

    scratch_shapes = [
        pltpu.VMEM((C, n_pad), jnp.bfloat16),    # cached V projection
        pltpu.VMEM((C8, n_pad), jnp.bfloat16),   # cached K projection
    ]

    flops = 2 * B * n_pad * ((C + C8) * C + C8 * C + n_pad * (C8 + C))
    bytes_accessed = (3 * B * C * n_pad * 4                       # x (full + tiled) + out
                      + (B * n_pad * n_pad * 2 if return_attention else 0)
                      + 2 * (C + 2 * C8) * C)                     # bf16 weights
    cost = pl.CostEstimate(flops=flops, transcendentals=B * n_pad * n_pad,
                           bytes_accessed=bytes_accessed)

    result = pl.pallas_call(
        kernel,
        out_shape=out_shape,
        grid_spec=pltpu.PrefetchScalarGridSpec(
            num_scalar_prefetch=0,
            grid=grid,
            in_specs=in_specs,
            out_specs=out_specs,
            scratch_shapes=scratch_shapes),
        compiler_params=pltpu.CompilerParams(
            dimension_semantics=("parallel", "arbitrary"),
            vmem_limit_bytes=_pick_vmem_limit()),
        cost_estimate=cost,
    )(x, x, wq, bq, w_vk, b_vk, gamma)

    if return_attention:
        out, attn = result
        if n_pad != N:
            out = out[:, :, :N]
            attn = attn[:, :N, :N]
        return out.reshape(B, C, H, W), attn

    out = result
    if n_pad != N:
        out = out[:, :, :N]
    return out.reshape(B, C, H, W)


def self_attention_reference(x_nchw, params):
    """Pure-JAX f32 reference mirroring the PyTorch forward."""
    B, C, H, W = x_nchw.shape
    N = H * W
    x = x_nchw.reshape(B, C, N)
    q = jnp.einsum("oc,bcn->bon", params["wq"], x) + params["bq"][None, :, None]
    k = jnp.einsum("oc,bcn->bon", params["wk"], x) + params["bk"][None, :, None]
    v = jnp.einsum("oc,bcn->bon", params["wv"], x) + params["bv"][None, :, None]
    logits = jnp.einsum("bci,bcj->bij", q, k)            # (B, N, N)
    attn = jax.nn.softmax(logits, axis=-1)
    o = jnp.einsum("bcj,bij->bci", v, attn)              # (B, C, N)
    out = params["gamma"][0] * o + x
    return out.reshape(B, C, H, W), attn


def init_params(key, in_channels):
    """Deterministic init. Conv2d(k=1) weights stored PyTorch-style as (out, in)."""
    c8 = in_channels // 8
    k1, k2, k3 = jax.random.split(key, 3)
    scale = 1.0 / jnp.sqrt(in_channels)
    return {
        "wq": jax.random.normal(k1, (c8, in_channels), jnp.float32) * scale,
        "bq": jnp.zeros((c8,), jnp.float32),
        "wk": jax.random.normal(k2, (c8, in_channels), jnp.float32) * scale,
        "bk": jnp.zeros((c8,), jnp.float32),
        "wv": jax.random.normal(k3, (in_channels, in_channels), jnp.float32) * scale,
        "bv": jnp.zeros((in_channels,), jnp.float32),
        # PyTorch initializes gamma to zero; nonzero here so the attention path
        # actually contributes to the residual output in the test.
        "gamma": jnp.array([0.5], jnp.float32),
    }


def _check(B, C, H, W, key):
    kx, kp = jax.random.split(key)
    x = jax.random.normal(kx, (B, C, H, W), jnp.float32)
    params = init_params(kp, C)
    out_ref, attn_ref = self_attention_reference(x, params)
    N = H * W

    # Fast path (matches the PyTorch forward: returns only `out`).
    out = jax.block_until_ready(self_attention_pallas(x, params))
    assert out.shape == (B, C, H, W)
    assert jnp.allclose(out, out_ref, atol=1e-1, rtol=1e-1)
    assert float(jnp.mean(jnp.abs(out - out_ref))) < 2e-2

    # Debug path: also emit the (B, N, N) attention map (bf16).
    out2, attn = self_attention_pallas(x, params, return_attention=True)
    out2 = jax.block_until_ready(out2)
    attn = jax.block_until_ready(attn).astype(jnp.float32)
    assert attn.shape == (B, N, N)
    assert jnp.allclose(out2, out_ref, atol=1e-1, rtol=1e-1)
    assert jnp.allclose(attn, attn_ref, atol=1e-1, rtol=1e-1)
    assert float(jnp.mean(jnp.abs(attn - attn_ref))) < 5e-3
    assert float(jnp.mean(jnp.abs(out2 - out_ref))) < 2e-2


if __name__ == "__main__":
    key = jax.random.PRNGKey(0)
    k1, k2, k3 = jax.random.split(key, 3)
    _check(2, 16, 8, 8, k1)      # N = 64   -> single full-extent q-tile
    _check(1, 32, 32, 32, k2)    # N = 1024 -> 4 q-tiles, cached K/V reused per tile
    _check(2, 16, 20, 20, k3)    # N = 400  -> padded to 512, masked softmax tail
    print("KERNEL_OK")
</pallas_src>

<mosaic_0001>
module attributes {stable_mosaic.version = 11 : i64} {
  func.func @_self_attention_kernel(%arg0: i32, %arg1: i32, %arg2: memref<1x16x64xf32, #tpu.memory_space<vmem>>, %arg3: memref<1x16x64xf32, #tpu.memory_space<vmem>>, %arg4: memref<2x16xbf16, #tpu.memory_space<vmem>>, %arg5: memref<2x1xf32, #tpu.memory_space<vmem>>, %arg6: memref<18x16xbf16, #tpu.memory_space<vmem>>, %arg7: memref<18x1xf32, #tpu.memory_space<vmem>>, %arg8: memref<1xf32, #tpu.memory_space<smem>>, %arg9: memref<1x16x64xf32, #tpu.memory_space<vmem>>, %arg10: memref<16x64xbf16, #tpu.memory_space<vmem>>, %arg11: memref<2x64xbf16, #tpu.memory_space<vmem>>) attributes {dimension_semantics = [#tpu.dimension_semantics<parallel>, #tpu.dimension_semantics<arbitrary>], iteration_bounds = array<i64: 2, 1>, scalar_prefetch = 0 : i64, scratch_operands = 2 : i64, tpu.core_type = #tpu.core_type<tc>, window_params = [{transform_indices = @transform_0, window_bounds = array<i64: 1, 16, 64>}, {transform_indices = @transform_1, window_bounds = array<i64: 1, 16, 64>}, {pipeline_mode = #tpu.pipeline_mode<synchronous>, transform_indices = @transform_2, window_bounds = array<i64: 2, 16>}, {pipeline_mode = #tpu.pipeline_mode<synchronous>, transform_indices = @transform_3, window_bounds = array<i64: 2, 1>}, {pipeline_mode = #tpu.pipeline_mode<synchronous>, transform_indices = @transform_4, window_bounds = array<i64: 18, 16>}, {pipeline_mode = #tpu.pipeline_mode<synchronous>, transform_indices = @transform_5, window_bounds = array<i64: 18, 1>}, {transform_indices = @transform_6, window_bounds = array<i64: 1>}, {transform_indices = @transform_7, window_bounds = array<i64: 1, 16, 64>}]} {
    %c0_i32 = arith.constant 0 : i32
    %0 = arith.cmpi eq, %arg1, %c0_i32 : i32
    %1 = arith.extui %0 : i1 to i32
    %c0_i32_0 = arith.constant 0 : i32
    %2 = arith.cmpi ne, %1, %c0_i32_0 : i32
    scf.if %2 {
      %c0_19 = arith.constant 0 : index
      %c0_20 = arith.constant 0 : index
      %c0_21 = arith.constant 0 : index
      %35 = vector.load %arg2[%c0_19, %c0_20, %c0_21] : memref<1x16x64xf32, #tpu.memory_space<vmem>>, vector<1x16x64xf32>
      %36 = vector.shape_cast %35 : vector<1x16x64xf32> to vector<16x64xf32>
      %37 = arith.truncf %36 : vector<16x64xf32> to vector<16x64xbf16>
      %c0_22 = arith.constant 0 : index
      %c0_23 = arith.constant 0 : index
      %38 = vector.load %arg6[%c0_22, %c0_23] : memref<18x16xbf16, #tpu.memory_space<vmem>>, vector<18x16xbf16>
      %cst_24 = arith.constant dense<0.000000e+00> : vector<18x64xf32>
      %39 = tpu.matmul %38, %37, %cst_24 {dimension_numbers = #tpu.dot_dimension_numbers<[1], [0], [0], [1], [0, 0, 1, 1], [], []>} : vector<18x16xbf16>, vector<16x64xbf16>, vector<18x64xf32> -> vector<18x64xf32>
      %c0_25 = arith.constant 0 : index
      %c0_26 = arith.constant 0 : index
      %40 = vector.load %arg7[%c0_25, %c0_26] : memref<18x1xf32, #tpu.memory_space<vmem>>, vector<18x1xf32>
      %41 = vector.broadcast %40 : vector<18x1xf32> to vector<18x64xf32>
      %42 = arith.addf %39, %41 : vector<18x64xf32>
      %43 = vector.extract_strided_slice %42 {offsets = [0, 0], sizes = [16, 64], strides = [1, 1]} : vector<18x64xf32> to vector<16x64xf32>
      %44 = arith.truncf %43 : vector<16x64xf32> to vector<16x64xbf16>
      %c0_27 = arith.constant 0 : index
      %c0_28 = arith.constant 0 : index
      %45 = vector.load %arg10[%c0_27, %c0_28] : memref<16x64xbf16, #tpu.memory_space<vmem>>, vector<16x64xbf16>
      tpu.vector_store %arg10[%c0_27, %c0_28], %44 {strides = array<i32>} : memref<16x64xbf16, #tpu.memory_space<vmem>>, vector<16x64xbf16>,
      %46 = vector.extract_strided_slice %42 {offsets = [16, 0], sizes = [2, 64], strides = [1, 1]} : vector<18x64xf32> to vector<2x64xf32>
      %47 = arith.truncf %46 : vector<2x64xf32> to vector<2x64xbf16>
      %c0_29 = arith.constant 0 : index
      %c0_30 = arith.constant 0 : index
      %48 = vector.load %arg11[%c0_29, %c0_30] : memref<2x64xbf16, #tpu.memory_space<vmem>>, vector<2x64xbf16>
      tpu.vector_store %arg11[%c0_29, %c0_30], %47 {strides = array<i32>} : memref<2x64xbf16, #tpu.memory_space<vmem>>, vector<2x64xbf16>,
    } else {
    }
    %c0 = arith.constant 0 : index
    %c0_1 = arith.constant 0 : index
    %c0_2 = arith.constant 0 : index
    %3 = vector.load %arg3[%c0, %c0_1, %c0_2] : memref<1x16x64xf32, #tpu.memory_space<vmem>>, vector<1x16x64xf32>
    %4 = vector.shape_cast %3 : vector<1x16x64xf32> to vector<16x64xf32>
    %c0_3 = arith.constant 0 : index
    %c0_4 = arith.constant 0 : index
    %5 = vector.load %arg4[%c0_3, %c0_4] : memref<2x16xbf16, #tpu.memory_space<vmem>>, vector<2x16xbf16>
    %6 = arith.truncf %4 : vector<16x64xf32> to vector<16x64xbf16>
    %cst = arith.constant dense<0.000000e+00> : vector<2x64xf32>
    %7 = tpu.matmul %5, %6, %cst {dimension_numbers = #tpu.dot_dimension_numbers<[1], [0], [0], [1], [0, 0, 1, 1], [], []>} : vector<2x16xbf16>, vector<16x64xbf16>, vector<2x64xf32> -> vector<2x64xf32>
    %c0_5 = arith.constant 0 : index
    %c0_6 = arith.constant 0 : index
    %8 = vector.load %arg5[%c0_5, %c0_6] : memref<2x1xf32, #tpu.memory_space<vmem>>, vector<2x1xf32>
    %9 = vector.broadcast %8 : vector<2x1xf32> to vector<2x64xf32>
    %10 = arith.addf %7, %9 : vector<2x64xf32>
    %11 = arith.truncf %10 : vector<2x64xf32> to vector<2x64xbf16>
    %c0_7 = arith.constant 0 : index
    %c0_8 = arith.constant 0 : index
    %12 = vector.load %arg11[%c0_7, %c0_8] : memref<2x64xbf16, #tpu.memory_space<vmem>>, vector<2x64xbf16>
    %cst_9 = arith.constant dense<0.000000e+00> : vector<64x64xf32>
    %13 = tpu.matmul %11, %12, %cst_9 {dimension_numbers = #tpu.dot_dimension_numbers<[0], [0], [1], [1], [0, 1, 1, 1], [], []>} : vector<2x64xbf16>, vector<2x64xbf16>, vector<64x64xf32> -> vector<64x64xf32>
    %cst_10 = arith.constant dense<0xFF800000> : vector<64xf32>
    %14 = vector.multi_reduction <maximumf>, %13, %cst_10 [1] : vector<64x64xf32> to vector<64xf32>
    %15 = vector.shape_cast %14 : vector<64xf32> to vector<64x1xf32>
    %16 = vector.broadcast %15 : vector<64x1xf32> to vector<64x64xf32>
    %17 = arith.subf %13, %16 : vector<64x64xf32>
    %18 = math.exp %17 : vector<64x64xf32>
    %cst_11 = arith.constant dense<0.000000e+00> : vector<64xf32>
    %19 = vector.multi_reduction <add>, %18, %cst_11 [1] : vector<64x64xf32> to vector<64xf32>
    %20 = vector.shape_cast %19 : vector<64xf32> to vector<64x1xf32>
    %21 = tpu.reciprocal %20 {approx = true} : vector<64x1xf32> -> vector<64x1xf32>
    %22 = arith.truncf %18 : vector<64x64xf32> to vector<64x64xbf16>
    %c0_12 = arith.constant 0 : index
    %c0_13 = arith.constant 0 : index
    %23 = vector.load %arg10[%c0_12, %c0_13] : memref<16x64xbf16, #tpu.memory_space<vmem>>, vector<16x64xbf16>
    %cst_14 = arith.constant dense<0.000000e+00> : vector<64x16xf32>
    %24 = tpu.matmul %22, %23, %cst_14 {dimension_numbers = #tpu.dot_dimension_numbers<[1], [1], [0], [0], [0, 0, 1, 0], [], []>} : vector<64x64xbf16>, vector<16x64xbf16>, vector<64x16xf32> -> vector<64x16xf32>
    %25 = vector.broadcast %21 : vector<64x1xf32> to vector<64x16xf32>
    %26 = arith.mulf %24, %25 : vector<64x16xf32>
    %27 = tpu.transpose %26, [1, 0] : vector<64x16xf32> -> vector<16x64xf32>
    %c0_15 = arith.constant 0 : index
    %28 = memref.load %arg8[%c0_15] : memref<1xf32, #tpu.memory_space<smem>>
    %29 = vector.broadcast %28 : f32 to vector<16x64xf32>
    %30 = arith.mulf %29, %27 : vector<16x64xf32>
    %31 = arith.addf %30, %4 : vector<16x64xf32>
    %c0_16 = arith.constant 0 : index
    %c0_17 = arith.constant 0 : index
    %c0_18 = arith.constant 0 : index
    %32 = vector.load %arg9[%c0_16, %c0_17, %c0_18] : memref<1x16x64xf32, #tpu.memory_space<vmem>>, vector<1x16x64xf32>
    %33 = vector.shape_cast %32 : vector<1x16x64xf32> to vector<16x64xf32>
    %34 = vector.shape_cast %31 : vector<16x64xf32> to vector<1x16x64xf32>
    tpu.vector_store %arg9[%c0_16, %c0_17, %c0_18], %34 {strides = array<i32>} : memref<1x16x64xf32, #tpu.memory_space<vmem>>, vector<1x16x64xf32>,
    return
  }
  func.func @transform_0(%arg0: i32, %arg1: i32) -> (i32, i32, i32) {
    %c0_i32 = arith.constant 0 : i32
    %c0_i32_0 = arith.constant 0 : i32
    %c0_i32_1 = arith.constant 0 : i32
    return %arg0, %c0_i32, %c0_i32_0 : i32, i32, i32
  }
  func.func @transform_1(%arg0: i32, %arg1: i32) -> (i32, i32, i32) {
    %c0_i32 = arith.constant 0 : i32
    %c0_i32_0 = arith.constant 0 : i32
    return %arg0, %c0_i32, %arg1 : i32, i32, i32
  }
  func.func @transform_2(%arg0: i32, %arg1: i32) -> (i32, i32) {
    %c0_i32 = arith.constant 0 : i32
    %c0_i32_0 = arith.constant 0 : i32
    %c0_i32_1 = arith.constant 0 : i32
    return %c0_i32, %c0_i32_0 : i32, i32
  }
  func.func @transform_3(%arg0: i32, %arg1: i32) -> (i32, i32) {
    %c0_i32 = arith.constant 0 : i32
    %c0_i32_0 = arith.constant 0 : i32
    %c0_i32_1 = arith.constant 0 : i32
    return %c0_i32, %c0_i32_0 : i32, i32
  }
  func.func @transform_4(%arg0: i32, %arg1: i32) -> (i32, i32) {
    %c0_i32 = arith.constant 0 : i32
    %c0_i32_0 = arith.constant 0 : i32
    %c0_i32_1 = arith.constant 0 : i32
    return %c0_i32, %c0_i32_0 : i32, i32
  }
  func.func @transform_5(%arg0: i32, %arg1: i32) -> (i32, i32) {
    %c0_i32 = arith.constant 0 : i32
    %c0_i32_0 = arith.constant 0 : i32
    %c0_i32_1 = arith.constant 0 : i32
    return %c0_i32, %c0_i32_0 : i32, i32
  }
  func.func @transform_6(%arg0: i32, %arg1: i32) -> i32 {
    %c0_i32 = arith.constant 0 : i32
    %c0_i32_0 = arith.constant 0 : i32
    return %c0_i32 : i32
  }
  func.func @transform_7(%arg0: i32, %arg1: i32) -> (i32, i32, i32) {
    %c0_i32 = arith.constant 0 : i32
    %c0_i32_0 = arith.constant 0 : i32
    return %arg0, %c0_i32, %arg1 : i32, i32, i32
  }
}

</mosaic_0001>

<bundles_post_ra>
// kernel: tpu_custom_call.1
= control target key start
LH: loop header
LB: loop body
LE: loop exit
PB: predicated region body
PF: predicated region fallthrough
CT: control target
= control target key end

     0   :  { %s1518_s0 = inlined_call_operand.vmem [shape: f32[2,16,64], index: 0, kind: input, shape index: {}]   ;;  %s1519_s1 = inlined_call_operand.hbm [shape: f32[2,16,64], index: 1, kind: input, shape index: {}]   ;;  %s1520_s2 = inlined_call_operand.vmem [shape: bf16[2,16], index: 2, kind: input, shape index: {}]   ;;  %s1521_s3 = inlined_call_operand.vmem [shape: f32[2,1], index: 3, kind: input, shape index: {}]   ;;  %s1522_s4 = inlined_call_operand.vmem [shape: bf16[18,16], index: 4, kind: input, shape index: {}]   ;;  %s1523_s5 = inlined_call_operand.vmem [shape: f32[18,1], index: 5, kind: input, shape index: {}]   ;;  %s1524_s6 = inlined_call_operand.<no memory space> [shape: f32[1], index: 6, kind: input, shape index: {}]   ;;  %s1525_s7 = inlined_call_operand.hbm [shape: f32[2,16,64], index: 7, kind: output, shape index: {}]  }
   0x1   :  { %12 = sst [smem:[#allocation4]] %s1524_s6 }
   0x2   :  { %13 = vsyncpa [#allocation6], 0 }
   0x3   :  { %15 = vsyncpa [#allocation6 + $0x1], 0 }
   0x4   :  { %16 = vsyncpa [#allocation7], 0 }
   0x5   :  { %18 = vsyncpa [#allocation7 + $0x1], 0  ;;  %s1266_s26 = smov 0   ;;  %s1268_s27 = smov 0  }
   0x6   :  { %s1270_s28 = smov 0   ;;  %s1272_s29 = smov 0  }
   0x7   :  { %s1274_s30 = smov 0   ;;  %s1276_s8 = smov 0  }
   0x8 LB: > { %s913_s6 = sadd.s32 4294967295, %s1212_s8   ;;  %s914_s9 = sadd.s32 4294967294, %s1212_s8   ;;  %s1212_s8 = sphi %s1276_s8, %s24_s8   ;;  %s1208_s30 = sphi %s1274_s30, %s1540_s30   ;;  %s1204_s29 = sphi %s1272_s29, %s1539_s29   ;;  %s1200_s28 = sphi %s1270_s28, %s1538_s28   ;;  %s1196_s27 = sphi %s1268_s27, %s1537_s27   ;;  %s1192_s26 = sphi %s1266_s26, %s1536_s26  }
   0x9   : > { %s36_s10 = sadd.s32 1, %s1208_s30  ;;  %s71_s11 = sadd.s32 1, %s1200_s28 }
   0xa   : > { %p38_p0 = scmp.ge.s32.totalorder %s36_s10, 2  ;;  %p78_p1 = scmp.ne.s32.totalorder %s1200_s28, %s1196_s27 }
   0xb   : > { %p79_p2 = scmp.eq.s32.totalorder %s1212_s8, 0  ;;  %p84_p3 = scmp.ne.s32.totalorder %s1196_s27, %s1192_s26 }
   0xc   : > { %s1542_s10 = smov (%p38_p0, %s36_s10), 0  ;;  %p85_p5 = scmp.eq.s32.totalorder %s913_s6, 0 }
   0xd   : > { %p1307_p4 = por %p79_p2, %p78_p1  ;;  %s66_s13 = ssub.s32 %s1208_s30, %s1542_s10 }
   0xe   : > { %p215_p6 = scmp.eq.s32.totalorder %s913_s6, 1  ;;  %p69_p7 = scmp.eq.s32.totalorder %s66_s13, 0 }
   0xf   : > { %p1313_p8 = por %p85_p5, %p84_p3  ;;  %p221_p10 = scmp.eq.s32.totalorder %s914_s9, 1 }
  0x10   : > { %p1317_p9 = por %p215_p6, %p78_p1  ;;  %p1007_p13 = scmp.lt.s32.totalorder %s1212_s8, 2 }
  0x11   : > { %s1322_s16 = scalar_select %p69_p7, %s1200_s28, %s71_s11  }
  0x12   : > { %s1529_s15 = scalar_select %p1317_p9, 1, 0 }
  0x13   : > { %p1324_p11 = por %p221_p10, %p84_p3  ;;  %s264_s18 = sand.u32 1, %s1200_s28  }
  0x14   : > { %s917_s19 = sshll.u32 %s264_s18, 4  ;;  %s943_s20 = sshll.u32 %s1208_s30, 8 }
  0x15   : > { %s1530_s17 = scalar_select %p1324_p11, 1, 0 }
  0x16   : > { %s1335_s23 = scalar_lea.hbm %s1519_s1, %s943_s20  ;;  %s268_s24 = scalar_lea.vmem [#allocation5], %s917_s19 }
  0x17   : > { %s276_s25 = sshll.u32 %s268_s24, 4  ;;  %p1341_p0 = pnand %p1007_p13, %p1307_p4  ;;  %s1337_s25 = int_to_ptr.vmem [resolvable:$true] %s276_s25 }
  0x18   : > { %s1346_s9 = scalar_lea.sflag [#allocation6], %s264_s18  ;;  %s1100_s11 = scalar_lea.hbm %s1335_s23, 256 }
  0x19   : > { %p1101_p2 = scmp.ne.s32.totalorder %s1335_s23, %s1100_s11  ;;  %p1102_p3 = pneg %p1341_p0 }
  0x1a   : > { %s1105_s12 = scalar_lea.hbm %s1519_s1, 512  ;;  %p1106_p4 = scmp.lt.u32.totalorder %s1335_s23, %s1519_s1 }
  0x1b   : > { %p1103_p5 = pnand %p1102_p3, %p1101_p2  ;;  %p1107_p7 = scmp.lt.u32.totalorder %s1105_s12, %s1100_s11 }
  0x1c   : > { %p1109_p13 = scmp.lt.u32.totalorder %s1100_s11, %s1335_s23 }
  0x1d   : > { %p1104_p6 = pneg %p1103_p5  ;;  %p1108_p10 = por %p1107_p7, %p1106_p4 }
  0x1f   : > { %p1110_p12 = por %p1109_p13, %p1108_p10 }
  0x21   : > { %p1111_p1 = pnand %p1110_p12, %p1104_p6 }
  0x23   : > { %1114 = shalt.err (!%p1111_p1)
}
  0x24   : > { %s1115_s18 = scalar_lea.vmem %s1337_s25, 256  ;;  %s1214_s22 = smov [#allocation5]  }
  0x25   : > { %p1116_p2 = scmp.ne.s32.totalorder %s1337_s25, %s1115_s18  ;;  %s1120_s24 = sshll.u32 %s1214_s22, 4  ;;  %s1121_s24 = int_to_ptr.vmem [resolvable:$false] %s1120_s24 }
  0x26   : > { %s1122_s13 = scalar_lea.vmem %s1121_s24, 512  ;;  %p1123_p9 = scmp.lt.s32.totalorder %s1337_s25, %s1121_s24 }
  0x27   : > { %p1118_p5 = pnand %p1116_p2, %p1102_p3  ;;  %p1124_p4 = scmp.lt.s32.totalorder %s1122_s13, %s1115_s18 }
  0x29   : > { %p1119_p11 = pneg %p1118_p5  ;;  %p1125_p7 = por %p1124_p4, %p1123_p9 }
  0x2b   : > { %p1126_p10 = pnand %p1125_p7, %p1119_p11 }
  0x2d   : > { %1129 = shalt.err (!%p1126_p10)
}
  0x2e   : > { %s1215_s11 = smov 128   ;;  %s1216_s19 = smov 8  }
  0x2f   : > { %1002 = dma.hbm_to_vmem [thread:$0]  (!%p1341_p0), %s1335_s23, 256, %s1337_s25, %s1346_s9, %s1215_s11, %s1215_s11, %s1216_s19  }
  0x30   : > { %p284_p12 = scmp.lt.s32.totalorder %s1212_s8, 3  ;;  %p1532_p1 = scmp.ge.s32.totalorder %s1212_s8, 1 }
  0x32   : > { %p285_p3 = pnand %p1532_p1, %p284_p12 }
  0x33   : > { %s1378_s12 = sand.u32 (!%p285_p3), 1, %s1196_s27  }
  0x34   : > { %288 = sbr.rel (%p285_p3) target bundleno = 1173 (0x495), region = 48  ;;  %s921_s20 = sshll.u32 (!%p285_p3), %s1378_s12, 4 }
  0x35   : > { %s291_s21 = scalar_lea.sflag (!%p285_p3), [#allocation6], %s1378_s12  ;;  %s294_s18 = scalar_lea.vmem (!%p285_p3), [#allocation5], %s921_s20 }
  0x3b   : > { %1183 = dma.done.wait (%p1313_p8), %s291_s21, 256  }
  0x3c   : > { %1185 = vsyncadd (%p1313_p8), %s291_s21, 4294967040  ;;  %p330_p9 = scmp.lt.s32.totalorder %s1204_s29, 1  ;;  %v1217_v0 = vmov 0.0   ;;  %vm1218_vm0 = vmmov 0   ;;  %v1219_v1 = vmov 0   ;;  %v1393_v4 = vld [vmem:[%s294_s18] sm:$0xff] }
  0x3d   : > { %967 = vmatprep.subr.bf16.mxu1 %v1217_v0  ;;  %969 = vmatprep.mubr.msk.bf16.mxu1 %vm1218_vm0, %v1217_v0  ;;  %v1395_v6 = vld [vmem:[%s294_s18 + $0x8] sm:$0xff]  ;;  %vm372_vm1 = vcmask 130048   ;;  %v435_v11 = vld [vmem:[%s1520_s2] sm:$0x1]  ;;  %vm431_vm2 = vcmask 516096   ;;  %vm518_vm3 = vcmask 1040384  }
  0x3e   : > { %s331_s23 = scalar_select %p330_p9, %s1204_s29, 1  ;;  %1064 = vset.pattern.permute.xlu0 %v1219_v1  ;;  %v436_v7 = vpack.c.bf16 %v1395_v6, %v1393_v4  ;;  %v1066_v8 = vld [vmem:[%s1522_s4] sm:$0xff]   ;;  %v1067_v9 = vld [vmem:[%s1522_s4 + $0x8] ss:$0 sps:$4 sm:$0x11]   ;;  %vm505_vm4 = vcmask 15360  }
  0x3f   : > { %v437_v10 = vld [vmem:[%s1521_s3] sm:$0x3]  ;;  %963 = vmatprep.mubr.msk.bf16.mxu0 %vm372_vm1, %v1066_v8  ;;  %v348_v12 = vld [vmem:[%s1523_s5 + $0x10] sm:$0x3]  ;;  %vm428_vm5 = vcmask 523264   ;;  %v347_v48 = vld [vmem:[%s1523_s5 + $0x8] sm:$0xff] }
  0x40   : > { %s944_s25 = sshll.u32 %s331_s23, 4  ;;  %968 = vmatpush3.bf16.msra.mxu1 %v436_v7  ;;  %440 = vperm.xlu0 %1064, %v437_v10   ;;  %v346_v29 = vld [vmem:[%s1523_s5] sm:$0xff]  ;;  %s793_s13 = sld [smem:[#allocation4]] }
  0x41   : > { %s334_s22 = scalar_lea.vmem %s1518_s0, %s944_s25  ;;  %s945_s11 = sshll.u32 %s1204_s29, 8 }
  0x42   : > { %v340_v2 = vld [vmem:[%s334_s22] sm:$0xff]  ;;  %v341_v3 = vld [vmem:[%s334_s22 + $0x8] sm:$0xff]  ;;  %s329_s19 = scalar_lea.vmem [#allocation8], %s921_s20  ;;  %s1465_s25 = scalar_lea.hbm %s1525_s7, %s945_s11 }
  0x43   : > { %v342_v5 = vpack.c.bf16 %v341_v3, %v340_v2  ;;  %970 = vmatmul.mubr.msk.bf16.vlgmr.msra.gmra.mrb[0].mxu1 %vm372_vm1, %v435_v11  ;;  %s816_s21 = sshll.u32 %s329_s19, 4  ;;  %s802_s29 = scalar_lea.sflag [#allocation7], %s1378_s12  ;;  %s1467_s21 = int_to_ptr.vmem [resolvable:$true] %s816_s21 }
  0x44   : > { %361 = vperm.xlu0 %1064, %v348_v12   ;;  %s1130_s20 = scalar_lea.vmem %s1467_s21, 256  ;;  %p1533_p11 = scmp.ne.s32.totalorder %s1529_s15, 0 }
  0x45   : > { %961 = vmatprep.subr.bf16.mxu0 %v342_v5  ;;  %p1131_p8 = scmp.ne.s32.totalorder %s1467_s21, %s1130_s20  ;;  %s1220_s6 = smov [#allocation8]  }
  0x46   : > { %962 = vmatpush3.bf16.msra.mxu0 %v342_v5  ;;  %s1134_s9 = sshll.u32 %s1220_s6, 4  ;;  %s1135_s9 = int_to_ptr.vmem [resolvable:$false] %s1134_s9 }
  0x47   : > { %p1132_p0 = pnand %p1131_p8, %p1533_p11  ;;  %s1136_s22 = scalar_lea.vmem %s1135_s9, 512 }
  0x48   : > { %p1137_p13 = scmp.lt.s32.totalorder %s1467_s21, %s1135_s9  ;;  %p1138_p2 = scmp.lt.s32.totalorder %s1136_s22, %s1130_s20 }
  0x49   : > { %964 = vmatmul.mubr.msk.bf16.vlgmr.msra.gmra.mrb[0].mxu0 %vm372_vm1, %v1067_v9  ;;  %p1133_p6 = pneg %p1132_p0 }
  0x4a   : > { %p1139_p5 = por %p1138_p2, %p1137_p13 }
  0x4c   : > { %p1140_p4 = pnand %p1139_p5, %p1133_p6 }
  0xbf   : > { %v441_v13 = vpop.permute.xlu0 %440 }
  0xc3   : > { %v362_v14 = vpop.permute.xlu0 %361 }
 0x116   : > { %v481_v15 = vpop.f32.mrb[0].mxu1 }
 0x117   : > { %v971_v18 = vpop.f32.mrb[1].mxu1  ;;  %v482_v19 = vadd.f32 %v481_v15, %v441_v13 }
 0x118   : > { %v484_v21 = vpop.f32.mrb[2].mxu1 }
 0x119   : > { %v972_v24 = vpop.f32.mrb[3].mxu1  ;;  %v487_v25 = vpack.c.bf16 %v482_v19, %v482_v19 }
 0x11b   : > { %489 = vxpose.xlu1.c.b16.start.end [1/1] (short) (narrow) %v487_v25, 64 }
 0x11c   : > { %v965_v16 = vpop.f32.mrb[0].mxu0 }
 0x11d   : > { %v422_v17 = vadd.f32 %v965_v16, %v362_v14  ;;  %v1414_v20 = vpop.f32.mrb[1].mxu0 }
 0x11e   : > { %v966_v22 = vpop.f32.mrb[2].mxu0 }
 0x11f   : > { %v430_v23 = vpack.c.bf16 %v422_v17, %v422_v17  ;;  %v1416_v26 = vpop.f32.mrb[3].mxu0  ;;  %1065 = vset.pattern.permute.xlu1 %v1219_v1 }
 0x121   : > { %432 = vst.msk [vmem:[#allocation3] sm:$0x1] %vm431_vm2, %v430_v23 }
 0x128   : > { %v488_v27 = vld [vmem:[#allocation3] sm:$0x1] }
 0x129   : > { %993 = vmatprep.subr.msk.bf16.mxu0 %vm518_vm3, %v488_v27  ;;  %v520_v28 = vsel %vm518_vm3, %v488_v27, 0 }
 0x12a   : > { %974 = vmatpush3.bf16.msra.mxu0 %v520_v28 }
 0x12b   : > { %351 = vperm.xlu1 %1065, %v346_v29  }
 0x181   : > { %v497_v30 = vpop.trf.xlu1 }
 0x182   : > { %975 = vmatprep.mubr.msk.bf16.mxu0 %vm505_vm4, %v497_v30 }
 0x185   : > { %v498_v31 = vpop.trf.xlu1 }
 0x186   : > { %976 = vmatmul.mubr.msk.bf16.vlgmr.msra.gmra.mrb[4].mxu0 %vm505_vm4, %v498_v31 }
 0x189   : > { %v499_v32 = vpop.trf.xlu1 }
 0x18a   : > { %979 = vmatprep.mubr.msk.bf16.mxu0 %vm505_vm4, %v499_v32 }
 0x18d   : > { %v500_v33 = vpop.trf.xlu1 }
 0x18e   : > { %980 = vmatmul.mubr.msk.bf16.gmra.mrb[8].mxu0 %vm505_vm4, %v500_v33 }
 0x1aa   : > { %v352_v51 = vpop.permute.xlu1 %351 }
 0x1ab   : > { %v414_v1 = vadd.f32 %v1414_v20, %v352_v51 }
 0x259   : > { %v977_v34 = vpop.f32.mrb[4].mxu0 }
 0x25a   : > { %v556_v35 = vpop.f32.mrb[5].mxu0  ;;  %v594_v36 = vsel %vm428_vm5, %v977_v34, -inf }
 0x25b   : > { %595 = vmax.xlane.f32.xlu1 %v594_v36  ;;  %v978_v37 = vpop.f32.mrb[6].mxu0  ;;  %v588_v40 = vsel %vm428_vm5, %v556_v35, -inf }
 0x25c   : > { %v559_v38 = vpop.f32.mrb[7].mxu0  ;;  %v597_v42 = vsel %vm428_vm5, %v978_v37, -inf }
 0x25d   : > { %v591_v39 = vsel %vm428_vm5, %v559_v38, -inf }
 0x25e   : > { %592 = vmax.xlane.f32.xlu0 %v591_v39 }
 0x25f   : > { %589 = vmax.xlane.f32.xlu1 %v588_v40 }
 0x261   : > { %v981_v41 = vpop.f32.mrb[8].mxu0 }
 0x262   : > { %v572_v43 = vpop.f32.mrb[9].mxu0  ;;  %v606_v47 = vsel %vm428_vm5, %v981_v41, -inf }
 0x263   : > { %598 = vmax.xlane.f32.xlu1 %v597_v42  ;;  %v1425_v44 = vpop.f32.mrb[10].mxu0  ;;  %v600_v45 = vsel %vm428_vm5, %v572_v43, -inf }
 0x264   : > { %v1428_v46 = vpop.f32.mrb[11].mxu0  ;;  %v609_v50 = vsel %vm428_vm5, %v1425_v44, -inf }
 0x265   : > { %v603_v49 = vsel %vm428_vm5, %v1428_v46, -inf }
 0x267   : > { %601 = vmax.xlane.f32.xlu1 %v600_v45 }
 0x26b   : > { %607 = vmax.xlane.f32.xlu1 %v606_v47 }
 0x274   : > { %356 = vperm.xlu0 %1064, %v347_v48  }
 0x293   : > { %604 = vmax.xlane.f32.xlu0 %v603_v49 }
 0x297   : > { %610 = vmax.xlane.f32.xlu0 %v609_v50 }
 0x2e8   : > { %v596_v52 = vpop.xlane.xlu1 %595 }
 0x2e9   : > { %v614_v53 = vsub.f32 %v977_v34, %v596_v52 }
 0x2eb   : > { %v593_v54 = vpop.xlane.xlu0 %592  ;;  %v624_v59 = vmul.f32 1.442695, %v614_v53 }
 0x2ec   : > { %v613_v55 = vsub.f32 %v559_v38, %v593_v54  ;;  %v590_v56 = vpop.xlane.xlu1 %589 }
 0x2ed   : > { %v612_v57 = vsub.f32 %v556_v35, %v590_v56 }
 0x2ee   : > { %v622_v58 = vmul.f32 1.442695, %v613_v55 }
 0x2ef   : > { %v620_v60 = vmul.f32 1.442695, %v612_v57 }
 0x2f0   : > { %1068 = vpow2.f32 %v622_v58  ;;  %v599_v61 = vpop.xlane.xlu1 %598 }
 0x2f1   : > { %1070 = vpow2.f32 %v620_v60  ;;  %v615_v62 = vsub.f32 %v978_v37, %v599_v61 }
 0x2f2   : > { %1072 = vpow2.f32 %v624_v59 }
 0x2f3   : > { %v626_v63 = vmul.f32 1.442695, %v615_v62  ;;  %v357_v0 = vpop.permute.xlu0 %356 }
 0x2f4   : > { %v417_v2 = vadd.f32 %v1416_v26, %v357_v0  ;;  %v602_v3 = vpop.xlane.xlu1 %601 }
 0x2f5   : > { %1074 = vpow2.f32 %v626_v63  ;;  %v616_v5 = vsub.f32 %v572_v43, %v602_v3 }
 0x2f6   : > { %v427_v7 = vpack.c.bf16 %v417_v2, %v414_v1 }
 0x2f7   : > { %v628_v8 = vmul.f32 1.442695, %v616_v5 }
 0x2f8   : > { %429 = vst.msk [vmem:[#allocation2] sm:$0xff] %vm428_vm5, %v427_v7  ;;  %v608_v9 = vpop.xlane.xlu1 %607 }
 0x2f9   : > { %1076 = vpow2.f32 %v628_v8  ;;  %v618_v10 = vsub.f32 %v981_v41, %v608_v9 }
 0x2fa   : > { %v1069_v11 = vpop.eup %1068 }
 0x2fb   : > { %v1071_v12 = vpop.eup %1070  ;;  %v632_v13 = vmul.f32 1.442695, %v618_v10  ;;  %v639_v14 = vsel %vm428_vm5, %v1069_v11, 0.0  ;;  %v794_v10 = vstv %s793_s13 }
 0x2fc   : > { %640 = vadd.xlane.f32.xlu0 %v639_v14  ;;  %v636_v15 = vsel %vm428_vm5, %v1071_v12, 0.0  ;;  %v668_v16 = vpack.c.bf16 %v1069_v11, %v1071_v12  ;;  %v1073_v17 = vpop.eup %1072 }
 0x2fd   : > { %1078 = vpow2.f32 %v632_v13  ;;  %637 = vadd.xlane.f32.xlu1 %v636_v15  ;;  %v642_v20 = vsel %vm428_vm5, %v1073_v17, 0.0 }
 0x2fe   : > { %985 = vmatprep.mubr.msk.bf16.mxu1 %vm428_vm5, %v668_v16 }
 0x2ff   : > { %v1075_v18 = vpop.eup %1074  ;;  %v672_v19 = vld [vmem:[#allocation2] sm:$0xff] }
 0x300   : > { %994 = vmatprep.subr.msk.bf16.mxu1 %vm428_vm5, %v672_v19  ;;  %v645_v21 = vsel %vm428_vm5, %v1075_v18, 0.0  ;;  %v686_v22 = vsel %vm428_vm5, %v672_v19, 0  ;;  %v669_v23 = vpack.c.bf16 %v1075_v18, %v1073_v17 }
 0x301   : > { %643 = vadd.xlane.f32.xlu1 %v642_v20  ;;  %646 = vadd.xlane.f32.xlu0 %v645_v21 }
 0x302   : > { %984 = vmatpush3.bf16.xpose.msra.mxu1 %v686_v22 }
 0x303   : > { %v1077_v24 = vpop.eup %1076 }
 0x304   : > { %v648_v25 = vsel %vm428_vm5, %v1077_v24, 0.0 }
 0x305   : > { %649 = vadd.xlane.f32.xlu1 %v648_v25 }
 0x307   : > { %v1079_v26 = vpop.eup %1078 }
 0x308   : > { %v654_v27 = vsel %vm428_vm5, %v1079_v26, 0.0 }
 0x309   : > { %986 = vmatmul.mubr.msk.bf16.vlgmr.msra.gmra.mrb[4].mxu1 %vm428_vm5, %v669_v23  ;;  %655 = vadd.xlane.f32.xlu1 %v654_v27 }
 0x320   : > { %v605_v28 = vpop.xlane.xlu0 %604 }
 0x321   : > { %v617_v29 = vsub.f32 %v1428_v46, %v605_v28 }
 0x323   : > { %v630_v30 = vmul.f32 1.442695, %v617_v29 }
 0x324   : > { %v611_v31 = vpop.xlane.xlu0 %610 }
 0x325   : > { %1080 = vpow2.f32 %v630_v30  ;;  %v619_v32 = vsub.f32 %v1425_v44, %v611_v31 }
 0x327   : > { %v634_v33 = vmul.f32 1.442695, %v619_v32 }
 0x329   : > { %1082 = vpow2.f32 %v634_v33 }
 0x32f   : > { %v1081_v34 = vpop.eup %1080 }
 0x330   : > { %v651_v35 = vsel %vm428_vm5, %v1081_v34, 0.0  ;;  %v670_v36 = vpack.c.bf16 %v1081_v34, %v1077_v24 }
 0x331   : > { %652 = vadd.xlane.f32.xlu0 %v651_v35 }
 0x332   : > { %989 = vmatprep.mubr.msk.bf16.mxu1 %vm428_vm5, %v670_v36 }
 0x333   : > { %v1083_v37 = vpop.eup %1082 }
 0x334   : > { %v657_v38 = vsel %vm428_vm5, %v1083_v37, 0.0  ;;  %v671_v39 = vpack.c.bf16 %v1083_v37, %v1079_v26 }
 0x335   : > { %658 = vadd.xlane.f32.xlu0 %v657_v38 }
 0x336   : > { %990 = vmatmul.mubr.msk.bf16.gmra.mrb[8].mxu1 %vm428_vm5, %v671_v39 }
 0x389   : > { %v641_v41 = vpop.xlane.xlu0 %640 }
 0x38a   : > { %v638_v40 = vpop.xlane.xlu1 %637 }
 0x38b   : > { %1084 = vrcp.f32 %v638_v40 }
 0x38c   : > { %1086 = vrcp.f32 %v641_v41 }
 0x38e   : > { %v644_v42 = vpop.xlane.xlu1 %643  ;;  %v647_v43 = vpop.xlane.xlu0 %646 }
 0x38f   : > { %1088 = vrcp.f32 %v644_v42 }
 0x390   : > { %1090 = vrcp.f32 %v647_v43 }
 0x392   : > { %v650_v56 = vpop.xlane.xlu1 %649 }
 0x393   : > { %1092 = vrcp.f32 %v650_v56 }
 0x395   : > { %v1085_v45 = vpop.eup %1084 }
 0x396   : > { %v1087_v50 = vpop.eup %1086  ;;  %v656_v58 = vpop.xlane.xlu1 %655 }
 0x399   : > { %v1089_v52 = vpop.eup %1088 }
 0x39a   : > { %v1091_v54 = vpop.eup %1090 }
 0x39d   : > { %v1093_v61 = vpop.eup %1092 }
 0x3be   : > { %v653_v57 = vpop.xlane.xlu0 %652 }
 0x3bf   : > { %1094 = vrcp.f32 %v653_v57 }
 0x3c0   : > { %1096 = vrcp.f32 %v656_v58 }
 0x3c2   : > { %v659_v59 = vpop.xlane.xlu0 %658 }
 0x3c3   : > { %1098 = vrcp.f32 %v659_v59 }
 0x3c9   : > { %v1095_v2 = vpop.eup %1094 }
 0x3ca   : > { %v1097_v5 = vpop.eup %1096 }
 0x3cd   : > { %v1099_v8 = vpop.eup %1098 }
 0x3dc   : > { %v987_v44 = vpop.f32.mrb[4].mxu1 }
 0x3dd   : > { %v722_v46 = vpop.f32.mrb[5].mxu1  ;;  %v755_v53 = vmul.f32 %v1089_v52, %v987_v44 }
 0x3de   : > { %v753_v47 = vmul.f32 %v1085_v45, %v722_v46  ;;  %v988_v48 = vpop.f32.mrb[6].mxu1 }
 0x3df   : > { %v725_v49 = vpop.f32.mrb[7].mxu1  ;;  %v756_v55 = vmul.f32 %v1091_v54, %v988_v48 }
 0x3e0   : > { %761 = vxpose.xlu1.b32.start [1/8] (short) (narrow) %v753_v47, 16  ;;  %v754_v51 = vmul.f32 %v1087_v50, %v725_v49 }
 0x3e4   : > { %762 = vxpose.xlu1.b32.cont [2/8] (short) (narrow) %v754_v51, 16 }
 0x3e8   : > { %763 = vxpose.xlu1.b32.cont [3/8] (short) (narrow) %v755_v53, 16 }
 0x3ec   : > { %764 = vxpose.xlu1.b32.cont [4/8] (short) (narrow) %v756_v55, 16 }
 0x409   : > { %v991_v60 = vpop.f32.mrb[8].mxu1 }
 0x40a   : > { %v738_v62 = vpop.f32.mrb[9].mxu1  ;;  %v759_v7 = vmul.f32 %v1097_v5, %v991_v60 }
 0x40b   : > { %v757_v63 = vmul.f32 %v1093_v61, %v738_v62  ;;  %v992_v0 = vpop.f32.mrb[10].mxu1 }
 0x40c   : > { %v741_v1 = vpop.f32.mrb[11].mxu1  ;;  %v760_v9 = vmul.f32 %v1099_v8, %v992_v0 }
 0x40d   : > { %765 = vxpose.xlu1.b32.cont [5/8] (short) (narrow) %v757_v63, 16  ;;  %v758_v3 = vmul.f32 %v1095_v2, %v741_v1 }
 0x411   : > { %766 = vxpose.xlu1.b32.cont [6/8] (short) (narrow) %v758_v3, 16 }
 0x415   : > { %767 = vxpose.xlu1.b32.cont [7/8] (short) (narrow) %v759_v7, 16 }
 0x419   : > { %768 = vxpose.xlu1.b32.end [8/8] (short) (narrow) %v760_v9, 16 }
 0x47d   : > { %v777_v11 = vpop.trf.xlu1 }
 0x47e   : > { %v795_v12 = vmul.f32 %v794_v10, %v777_v11 }
 0x480   : > { %v797_v13 = vadd.f32 %v795_v12, %v1393_v4 }
 0x481   : > { %v778_v14 = vpop.trf.xlu1 }
 0x482   : > { %799 = vst.msk [vmem:[%s329_s19] sm:$0xff] %vm428_vm5, %v797_v13  ;;  %v796_v15 = vmul.f32 %v794_v10, %v778_v14 }
 0x484   : > { %v798_v4 = vadd.f32 %v796_v15, %v1395_v6 }
 0x486   : > { %800 = vst.msk [vmem:[%s329_s19 + $0x8] sm:$0xff] %vm428_vm5, %v798_v4 }
 0x487   : > { %1143 = shalt.err (!%p1140_p4)
}
 0x488   : > { %s1144_s14 = scalar_lea.hbm %s1465_s25, 256  ;;  %s1148_s11 = scalar_lea.hbm %s1525_s7, 512 }
 0x489   : > { %p1145_p7 = scmp.ne.s32.totalorder %s1465_s25, %s1144_s14  ;;  %p1149_p1 = scmp.lt.u32.totalorder %s1465_s25, %s1525_s7 }
 0x48a   : > { %p1150_p3 = scmp.lt.u32.totalorder %s1148_s11, %s1144_s14  ;;  %p1152_p8 = scmp.lt.u32.totalorder %s1144_s14, %s1465_s25 }
 0x48b   : > { %p1146_p10 = pnand %p1145_p7, %p1533_p11 }
 0x48c   : > { %p1151_p9 = por %p1150_p3, %p1149_p1 }
 0x48d   : > { %p1147_p12 = pneg %p1146_p10 }
 0x48e   : > { %p1153_p0 = por %p1152_p8, %p1151_p9 }
 0x490   : > { %p1154_p6 = pnand %p1153_p0, %p1147_p12 }
 0x492   : > { %1157 = shalt.err (!%p1154_p6)
}
 0x493   : > { %s1221_s23 = smov 128   ;;  %s1222_s20 = smov 8  }
 0x494   : > { %997 = dma.vmem_to_hbm [thread:$0]  (%p1533_p11), %s1467_s21, 256, %s1465_s25, %s802_s29, %s1221_s23, %s1221_s23, %s1222_s20  }
 0x495 PF: > { %s831_s6 = sand.u32 1, %s1192_s26   ;;  %p1534_p13 = scmp.ne.s32.totalorder %s1530_s17, 0 }
 0x496   : > { %p1535_p2 = scmp.ge.s32.totalorder %s1212_s8, 2  ;;  %s832_s9 = scalar_lea.sflag [#allocation7], %s831_s6 }
 0x498   : > { %p1004_p5 = pnand %p1535_p2, %p1534_p13 }
 0x49a   : > { %1187 = dma.done.wait (!%p1004_p5), %s832_s9, 256  }
 0x49b   : > { %1189 = vsyncadd (!%p1004_p5), %s832_s9, 4294967040  ;;  %s24_s8 = sadd.s32 1, %s1212_s8   ;;  %s1536_s26 = smov %s1196_s27 }
 0x49c   : > { %p21_p4 = scmp.ge.s32.totalorder %s24_s8, 4   ;;  %s1537_s27 = smov %s1200_s28 }
 0x49d   : > { %s1538_s28 = smov %s1322_s16  ;;  %s1539_s29 = smov %s1208_s30 }
 0x49e   : > { %s1540_s30 = smov %s1542_s10  ;;  %23 = sbr.rel (!%p21_p4) target bundleno = 8 (0x8), region = 100 }
 0x4a5   :  { %837 = vsyncpa [#allocation6], 1 }
 0x4a6   :  { %839 = vsyncpa [#allocation6 + $0x1], 1 }
 0x4a7   :  { %840 = vsyncpa [#allocation7], 1 }
 0x4a8   :  { %842 = vsyncpa [#allocation7 + $0x1], 1 }

</bundles_post_ra>
